<compile_context>
chip_gen: v6e
topology: v6e:2x2x1
jax: 0.10.0
libtpu: 0.0.40
codegen_flags: <defaults>
</compile_context>

<pallas_src>
import math

import jax
import jax.numpy as jnp
import numpy as np
from jax.experimental import pallas as pl
from jax.experimental.pallas import tpu as pltpu


def _round_up(x, m):
    return ((x + m - 1) // m) * m


def _cdiv(a, b):
    return -(-a // b)


def _attribute_loss_kernel(mask_ref, c_ref, l_ref, o_ref, acc_ref):
    # mask_ref: (8, W)  0/1 float32, replicated over sublanes (resident).
    # c_ref, l_ref: (TR, W) row tile of codes / labels (native dtype).
    # o_ref: (1, 1, 1) float32 per-split partial sum (resident across inner axis).
    # acc_ref: (8, 128) float32 lane-shaped partial accumulator (scratch).
    i = pl.program_id(1)
    tr, w = c_ref.shape

    @pl.when(i == 0)
    def _init():
        acc_ref[...] = jnp.zeros_like(acc_ref)
        o_ref[...] = jnp.zeros_like(o_ref)

    d = c_ref[...].astype(jnp.float32) - l_ref[...].astype(jnp.float32)
    e = d * d
    # Layout-preserving reshapes (aligned to the native (8,128) tiling): the
    # reduction over row-groups and lane-tiles lowers to pure VPU adds.
    e4 = e.reshape(tr // 8, 8, w // 128, 128)
    m4 = mask_ref[...].reshape(1, 8, w // 128, 128)
    p = jnp.sum(e4 * m4, axis=0)            # (8, W//128, 128)
    acc_ref[...] += jnp.sum(p, axis=1)      # (8, 128)

    @pl.when(i == pl.num_programs(1) - 1)
    def _finalize():
        # Single cross-lane/sublane reduce per split, done once.
        o_ref[...] += jnp.sum(acc_ref[...])


def attribute_loss(codes, labels, attributes):
    """Pallas implementation of AttributeLoss.forward.

    codes, labels: (B, D) arrays; attributes: static sequence of column indices
    (module config). Returns a scalar float32 loss.
    """
    codes = jnp.asarray(codes)
    labels = jnp.asarray(labels)
    assert codes.ndim == 2 and codes.shape == labels.shape
    B, D = codes.shape

    # ---- Lane folding: (B, D) -> (R, W), W a multiple of 128 (pure reshape) --
    f = 128 // math.gcd(D, 128)
    W = D * f
    B1 = _round_up(B, f)
    if B1 != B:
        codes = jnp.pad(codes, ((0, B1 - B), (0, 0)))
        labels = jnp.pad(labels, ((0, B1 - B), (0, 0)))
    R = B1 // f
    if f > 1:
        codes = codes.reshape(R, W)
        labels = labels.reshape(R, W)

    # ---- Static 0/1 mask, tiled to W and replicated over 8 sublanes ----------
    base = np.zeros((D,), dtype=np.float32)
    if len(attributes):
        base[np.asarray(attributes, dtype=np.int64)] = 1.0
    mask = jnp.asarray(np.tile(np.tile(base, f)[None, :], (8, 1)))   # (8, W)

    # ---- Generation-aware tile sizing (kernel is HBM-bound) ------------------
    try:
        vmem_cap = int(getattr(pltpu.get_tpu_info(), "vmem_capacity_bytes",
                               64 << 20))
    except Exception:
        vmem_cap = 64 << 20                 # conservative: 64 MiB per TensorCore
    big_vmem = vmem_cap >= (96 << 20)       # 128-MiB-class chips
    in_flight_budget = (32 << 20) if big_vmem else (24 << 20)
    vmem_clamp = (80 << 20) if big_vmem else (44 << 20)

    itemsize = codes.dtype.itemsize + labels.dtype.itemsize   # both inputs / row
    per_row_bytes = 2 * W * itemsize                          # x2 pipeline buffers
    tr = max(8, ((in_flight_budget // per_row_bytes) // 8) * 8)
    tr = min(tr, _round_up(R, 8))

    # ---- Split the batch grid in two so multi-TC chips use both cores --------
    n_tiles = _cdiv(R, tr)
    num_splits = 2 if n_tiles >= 2 else 1
    steps = _cdiv(n_tiles, num_splits)
    tr = min(tr, _round_up(_cdiv(R, num_splits * steps), 8))  # trim padding waste
    R_pad = num_splits * steps * tr
    if R_pad != R:
        codes = jnp.pad(codes, ((0, R_pad - R), (0, 0)))
        labels = jnp.pad(labels, ((0, R_pad - R), (0, 0)))

    # VMEM limit from padded shapes: inputs (2x2 buffers) + mask (2 buffers)
    # + (8,128) scratch + headroom.
    vmem_bytes = tr * per_row_bytes + 2 * 8 * W * 4 + 8 * 128 * 4 + (2 << 20)
    vmem_bytes = int(min(max(vmem_bytes, 4 << 20), vmem_clamp))

    grid = (num_splits, steps)
    out = pl.pallas_call(
        _attribute_loss_kernel,
        out_shape=jax.ShapeDtypeStruct((num_splits, 1, 1), jnp.float32),
        grid=grid,
        in_specs=[
            pl.BlockSpec((8, W), lambda c, i: (0, 0)),                # mask
            pl.BlockSpec((tr, W), lambda c, i: (c * steps + i, 0)),   # codes
            pl.BlockSpec((tr, W), lambda c, i: (c * steps + i, 0)),   # labels
        ],
        out_specs=pl.BlockSpec((1, 1, 1), lambda c, i: (c, 0, 0)),
        scratch_shapes=[pltpu.VMEM((8, 128), jnp.float32)],
        compiler_params=pltpu.CompilerParams(
            dimension_semantics=("parallel", "arbitrary"),
            vmem_limit_bytes=vmem_bytes,
        ),
    )(mask, codes, labels)

    # Tiny cross-split sum + mean (true batch size, not padded).
    return jnp.sum(out) * (1.0 / float(B))


def _reference(codes, labels, attributes):
    idx = jnp.asarray(np.asarray(attributes, dtype=np.int32))
    attr = jnp.sum((codes[:, idx] - labels[:, idx]) ** 2, axis=1)
    return jnp.mean(attr)


if __name__ == "__main__":
    key = jax.random.PRNGKey(0)

    # Case 1: small D (exercises lane folding f=8 and batch padding).
    k1, k2, k3, k4 = jax.random.split(key, 4)
    batch, latent_dim = 10, 16
    codes = jax.random.normal(k1, (batch, latent_dim), dtype=jnp.float32)
    labels = jax.random.normal(k2, (batch, latent_dim), dtype=jnp.float32)
    attributes = (0, 2, 3, 5, 7)

    loss = jax.block_until_ready(attribute_loss(codes, labels, attributes))
    ref = _reference(codes, labels, attributes)
    assert jnp.allclose(loss, ref, rtol=1e-5, atol=1e-5), (loss, ref)

    # Case 2: D already a multiple of 128 (no folding path) + odd batch.
    batch2, latent_dim2 = 9, 256
    codes2 = jax.random.normal(k3, (batch2, latent_dim2), dtype=jnp.float32)
    labels2 = jax.random.normal(k4, (batch2, latent_dim2), dtype=jnp.float32)
    attributes2 = (0, 5, 100, 255)

    loss2 = jax.block_until_ready(attribute_loss(codes2, labels2, attributes2))
    ref2 = _reference(codes2, labels2, attributes2)
    assert jnp.allclose(loss2, ref2, rtol=1e-5, atol=1e-5), (loss2, ref2)

    print("KERNEL_OK")
</pallas_src>

<mosaic_0001>
module attributes {stable_mosaic.version = 11 : i64} {
  func.func @_attribute_loss_kernel(%arg0: i32, %arg1: i32, %arg2: memref<8x128xf32, #tpu.memory_space<vmem>>, %arg3: memref<8x128xf32, #tpu.memory_space<vmem>>, %arg4: memref<8x128xf32, #tpu.memory_space<vmem>>, %arg5: memref<1x1x1xf32, #tpu.memory_space<vmem>>, %arg6: memref<8x128xf32, #tpu.memory_space<vmem>>) attributes {dimension_semantics = [#tpu.dimension_semantics<parallel>, #tpu.dimension_semantics<arbitrary>], iteration_bounds = array<i64: 1, 1>, scalar_prefetch = 0 : i64, scratch_operands = 1 : i64, tpu.core_type = #tpu.core_type<tc>, window_params = [{pipeline_mode = #tpu.pipeline_mode<synchronous>, transform_indices = @transform_0, window_bounds = array<i64: 8, 128>}, {transform_indices = @transform_1, window_bounds = array<i64: 8, 128>}, {transform_indices = @transform_2, window_bounds = array<i64: 8, 128>}, {transform_indices = @transform_3, window_bounds = array<i64: 1, 1, 1>}]} {
    %c0_i32 = arith.constant 0 : i32
    %0 = arith.cmpi eq, %arg1, %c0_i32 : i32
    %1 = arith.extui %0 : i1 to i32
    %c0_i32_0 = arith.constant 0 : i32
    %2 = arith.cmpi ne, %1, %c0_i32_0 : i32
    scf.if %2 {
      %cst_13 = arith.constant 0.000000e+00 : f32
      %19 = vector.broadcast %cst_13 : f32 to vector<8x128xf32>
      %c0_14 = arith.constant 0 : index
      %c0_15 = arith.constant 0 : index
      %20 = vector.load %arg6[%c0_14, %c0_15] : memref<8x128xf32, #tpu.memory_space<vmem>>, vector<8x128xf32>
      tpu.vector_store %arg6[%c0_14, %c0_15], %19 {strides = array<i32>} : memref<8x128xf32, #tpu.memory_space<vmem>>, vector<8x128xf32>,
      %cst_16 = arith.constant 0.000000e+00 : f32
      %21 = vector.broadcast %cst_16 : f32 to vector<1x1x1xf32>
      %c0_17 = arith.constant 0 : index
      %c0_18 = arith.constant 0 : index
      %c0_19 = arith.constant 0 : index
      %22 = vector.load %arg5[%c0_17, %c0_18, %c0_19] : memref<1x1x1xf32, #tpu.memory_space<vmem>>, vector<1x1x1xf32>
      tpu.vector_store %arg5[%c0_17, %c0_18, %c0_19], %21 {strides = array<i32>} : memref<1x1x1xf32, #tpu.memory_space<vmem>>, vector<1x1x1xf32>,
    } else {
    }
    %c0 = arith.constant 0 : index
    %c0_1 = arith.constant 0 : index
    %3 = vector.load %arg3[%c0, %c0_1] : memref<8x128xf32, #tpu.memory_space<vmem>>, vector<8x128xf32>
    %c0_2 = arith.constant 0 : index
    %c0_3 = arith.constant 0 : index
    %4 = vector.load %arg4[%c0_2, %c0_3] : memref<8x128xf32, #tpu.memory_space<vmem>>, vector<8x128xf32>
    %5 = arith.subf %3, %4 : vector<8x128xf32>
    %6 = arith.mulf %5, %5 : vector<8x128xf32>
    %7 = vector.shape_cast %6 : vector<8x128xf32> to vector<1x8x1x128xf32>
    %c0_4 = arith.constant 0 : index
    %c0_5 = arith.constant 0 : index
    %8 = vector.load %arg2[%c0_4, %c0_5] : memref<8x128xf32, #tpu.memory_space<vmem>>, vector<8x128xf32>
    %9 = vector.shape_cast %8 : vector<8x128xf32> to vector<1x8x1x128xf32>
    %10 = arith.mulf %7, %9 : vector<1x8x1x128xf32>
    %cst = arith.constant dense<0.000000e+00> : vector<8x1x128xf32>
    %11 = vector.multi_reduction <add>, %10, %cst [0] : vector<1x8x1x128xf32> to vector<8x1x128xf32>
    %c0_6 = arith.constant 0 : index
    %c0_7 = arith.constant 0 : index
    %12 = vector.load %arg6[%c0_6, %c0_7] : memref<8x128xf32, #tpu.memory_space<vmem>>, vector<8x128xf32>
    %cst_8 = arith.constant dense<0.000000e+00> : vector<8x128xf32>
    %13 = vector.multi_reduction <add>, %11, %cst_8 [1] : vector<8x1x128xf32> to vector<8x128xf32>
    %14 = arith.addf %12, %13 : vector<8x128xf32>
    %c0_9 = arith.constant 0 : index
    %c0_10 = arith.constant 0 : index
    %15 = vector.load %arg6[%c0_9, %c0_10] : memref<8x128xf32, #tpu.memory_space<vmem>>, vector<8x128xf32>
    tpu.vector_store %arg6[%c0_9, %c0_10], %14 {strides = array<i32>} : memref<8x128xf32, #tpu.memory_space<vmem>>, vector<8x128xf32>,
    %c0_i32_11 = arith.constant 0 : i32
    %16 = arith.cmpi eq, %arg1, %c0_i32_11 : i32
    %17 = arith.extui %16 : i1 to i32
    %c0_i32_12 = arith.constant 0 : i32
    %18 = arith.cmpi ne, %17, %c0_i32_12 : i32
    scf.if %18 {
      %c0_13 = arith.constant 0 : index
      %c0_14 = arith.constant 0 : index
      %c0_15 = arith.constant 0 : index
      %19 = vector.load %arg5[%c0_13, %c0_14, %c0_15] : memref<1x1x1xf32, #tpu.memory_space<vmem>>, vector<1x1x1xf32>
      %c0_16 = arith.constant 0 : index
      %c0_17 = arith.constant 0 : index
      %20 = vector.load %arg6[%c0_16, %c0_17] : memref<8x128xf32, #tpu.memory_space<vmem>>, vector<8x128xf32>
      %21 = vector.shape_cast %20 : vector<8x128xf32> to vector<1x8x128xf32>
      %cst_18 = arith.constant dense<0.000000e+00> : vector<1xf32>
      %22 = vector.multi_reduction <add>, %21, %cst_18 [1, 2] : vector<1x8x128xf32> to vector<1xf32>
      %23 = vector.shape_cast %22 : vector<1xf32> to vector<1x1x1xf32>
      %24 = vector.extract %23[0, 0, 0] : f32 from vector<1x1x1xf32>
      %25 = vector.broadcast %24 : f32 to vector<1x1x1xf32>
      %26 = arith.addf %19, %25 : vector<1x1x1xf32>
      %c0_19 = arith.constant 0 : index
      %c0_20 = arith.constant 0 : index
      %c0_21 = arith.constant 0 : index
      %27 = vector.load %arg5[%c0_19, %c0_20, %c0_21] : memref<1x1x1xf32, #tpu.memory_space<vmem>>, vector<1x1x1xf32>
      tpu.vector_store %arg5[%c0_19, %c0_20, %c0_21], %26 {strides = array<i32>} : memref<1x1x1xf32, #tpu.memory_space<vmem>>, vector<1x1x1xf32>,
    } else {
    }
    return
  }
  func.func @transform_0(%arg0: i32, %arg1: i32) -> (i32, i32) {
    %c0_i32 = arith.constant 0 : i32
    %c0_i32_0 = arith.constant 0 : i32
    %c0_i32_1 = arith.constant 0 : i32
    return %c0_i32, %c0_i32_0 : i32, i32
  }
  func.func @transform_1(%arg0: i32, %arg1: i32) -> (i32, i32) {
    %c1_i32 = arith.constant 1 : i32
    %0 = arith.muli %arg0, %c1_i32 : i32
    %1 = arith.addi %0, %arg1 : i32
    %c0_i32 = arith.constant 0 : i32
    %c0_i32_0 = arith.constant 0 : i32
    return %1, %c0_i32 : i32, i32
  }
  func.func @transform_2(%arg0: i32, %arg1: i32) -> (i32, i32) {
    %c1_i32 = arith.constant 1 : i32
    %0 = arith.muli %arg0, %c1_i32 : i32
    %1 = arith.addi %0, %arg1 : i32
    %c0_i32 = arith.constant 0 : i32
    %c0_i32_0 = arith.constant 0 : i32
    return %1, %c0_i32 : i32, i32
  }
  func.func @transform_3(%arg0: i32, %arg1: i32) -> (i32, i32, i32) {
    %c0_i32 = arith.constant 0 : i32
    %c0_i32_0 = arith.constant 0 : i32
    %c0_i32_1 = arith.constant 0 : i32
    return %arg0, %c0_i32, %c0_i32_0 : i32, i32, i32
  }
}

</mosaic_0001>

<bundles_post_ra>
// kernel: tpu_custom_call.1
= control target key start
LH: loop header
LB: loop body
LE: loop exit
PB: predicated region body
PF: predicated region fallthrough
CT: control target
= control target key end

     0   :  { %8 = vsyncpa [#allocation4], 0  ;;  %s440_s0 = inlined_call_operand.hbm [shape: f32[8,128], index: 0, kind: input, shape index: {}]   ;;  %s441_s1 = inlined_call_operand.hbm [shape: f32[8,128], index: 1, kind: input, shape index: {}]   ;;  %s442_s2 = inlined_call_operand.hbm [shape: f32[8,128], index: 2, kind: input, shape index: {}]   ;;  %s443_s3 = inlined_call_operand.hbm [shape: f32[1,1,1], index: 3, kind: output, shape index: {}]  }
   0x1   :  { %9 = vsyncpa [#allocation7], 0 }
   0x2   :  { %10 = vsyncpa [#allocation5], 0  ;;  %s400_s12 = smov [#allocation6]   ;;  %s401_s14 = smov [#allocation3]  }
   0x3   :  { %s30_s13 = sshll.u32 %s400_s12, 4  ;;  %s17_s15 = sshll.u32 %s401_s14, 4  ;;  %s31_s13 = int_to_ptr.vmem [resolvable:$true] %s30_s13  ;;  %s18_s15 = int_to_ptr.vmem [resolvable:$true] %s17_s15 }
   0x4   :  { %s322_s16 = scalar_lea.vmem %s31_s13, 128  ;;  %p327_p1 = scmp.lt.s32.totalorder %s31_s13, %s31_s13 }
   0x5   :  { %p323_p0 = scmp.ne.s32.totalorder %s31_s13, %s322_s16  ;;  %p328_p2 = scmp.lt.s32.totalorder %s322_s16, %s322_s16 }
   0x7   :  { %p329_p3 = por %p328_p2, %p327_p1 }
   0x9   :  { %p330_p4 = pnand %p329_p3, %p323_p0 }
   0xb   :  { %333 = shalt.err (!%p330_p4)
}
   0xc   :  { %33 = dma.hbm_to_vmem [thread:$0]  %s441_s1, 128, %s31_s13, [#allocation7]  }
   0xd   :  { %s342_s19 = scalar_lea.vmem %s18_s15, 128  ;;  %p347_p6 = scmp.lt.s32.totalorder %s18_s15, %s18_s15 }
   0xe   :  { %p343_p5 = scmp.ne.s32.totalorder %s18_s15, %s342_s19  ;;  %p348_p7 = scmp.lt.s32.totalorder %s342_s19, %s342_s19 }
  0x10   :  { %p349_p8 = por %p348_p7, %p347_p6 }
  0x12   :  { %p350_p9 = pnand %p349_p8, %p343_p5 }
  0x14   :  { %353 = shalt.err (!%p350_p9)
}
  0x15   :  { %20 = dma.hbm_to_vmem [thread:$0]  %s440_s0, 128, %s18_s15, [#allocation4]  }
  0x16   :  { %s402_s22 = smov [#allocation8]  }
  0x17   :  { %s43_s23 = sshll.u32 %s402_s22, 4  ;;  %s44_s23 = int_to_ptr.vmem [resolvable:$true] %s43_s23 }
  0x18   :  { %s362_s24 = scalar_lea.vmem %s44_s23, 128  ;;  %p367_p11 = scmp.lt.s32.totalorder %s44_s23, %s44_s23 }
  0x19   :  { %p363_p10 = scmp.ne.s32.totalorder %s44_s23, %s362_s24  ;;  %p368_p12 = scmp.lt.s32.totalorder %s362_s24, %s362_s24 }
  0x1b   :  { %p369_p13 = por %p368_p12, %p367_p11 }
  0x1d   :  { %p370_p0 = pnand %p369_p13, %p363_p10 }
  0x1f   :  { %373 = shalt.err (!%p370_p0)
}
  0x20   :  { %46 = dma.hbm_to_vmem [thread:$0]  %s442_s2, 128, %s44_s23, [#allocation7]  }
  0x21   :  { %394 = dma.done.wait [#allocation4], 128  }
  0x22   :  { %395 = vsyncadd [#allocation4], 4294967168 }
  0x23   :  { %396 = dma.done.wait [#allocation7], 256  }
  0x24   :  { %397 = vsyncadd [#allocation7], 4294967040  ;;  %vm63_vm0 = vcmask 0   ;;  %v74_v0 = vlaneseq  ;;  %v403_v1 = vmov 0.0   ;;  %v404_v2 = vmov 1966171168  }
  0x25   :  { %64 = vst.msk [vmem:[#allocation9] sm:$0x1] %vm63_vm0, %v403_v1  ;;  %v72_v3 = vunpack.c.l.s4 %v404_v2  ;;  %v65_v7 = vld [vmem:[#allocation6] sm:$0xff]  ;;  %v66_v8 = vld [vmem:[#allocation8] sm:$0xff]  ;;  %v127_v9 = vld [vmem:[#allocation3] sm:$0xff]  ;;  %s405_s0 = smov [#allocation9]  }
  0x26   :  { %v75_v4 = vshrl.u32 %v74_v0, 7  ;;  %v67_v10 = vsub.f32 %v65_v7, %v66_v8  ;;  %v129_v11 = vcombine.high %v127_v9, %v127_v9  ;;  %s295_s2 = sshll.u32 %s405_s0, 4  ;;  %s296_s2 = int_to_ptr.vmem [resolvable:$true] %s295_s2 }
  0x27   :  { %v73_v5 = vunpack.c.0.s8 %v72_v3  ;;  %s374_s27 = scalar_lea.vmem %s296_s2, 16  ;;  %s378_s28 = scalar_lea.vmem %s296_s2, 32 }
  0x28   :  { %v68_v13 = vmul.f32 %v67_v10, %v67_v10  ;;  %p375_p1 = scmp.ne.s32.totalorder %s296_s2, %s374_s27  ;;  %p379_p2 = scmp.lt.s32.totalorder %s296_s2, %s296_s2 }
  0x29   :  { %v76_v6 = vsub.s32 %v73_v5, %v75_v4  ;;  %p380_p3 = scmp.lt.s32.totalorder %s378_s28, %s374_s27 }
  0x2a   :  { %v70_v17 = vcombine.high %v68_v13, %v68_v13 }
  0x2b   :  { %v136_v12 = vrot.slane %v127_v9, %v76_v6  ;;  %v143_v14 = vrot.slane %v129_v11, %v76_v6  ;;  %v77_v18 = vrot.slane %v68_v13, %v76_v6  ;;  %p381_p4 = por %p380_p3, %p379_p2 }
  0x2c   :  { %v84_v22 = vrot.slane %v70_v17, %v76_v6  ;;  %v274_v2 = vld [vmem:[#allocation9] sm:$0x1] }
  0x2d   :  { %v144_v15 = vcombine.high %v136_v12, %v136_v12  ;;  %v152_v16 = vrot.slane %v136_v12, %v76_v6  ;;  %v145_v19 = vcombine.high %v143_v14, %v143_v14  ;;  %v159_v20 = vrot.slane %v143_v14, %v76_v6  ;;  %p382_p5 = pnand %p381_p4, %p375_p1 }
  0x2e   :  { %v85_v23 = vcombine.high %v77_v18, %v77_v18  ;;  %v93_v24 = vrot.slane %v77_v18, %v76_v6  ;;  %v86_v29 = vcombine.high %v84_v22, %v84_v22  ;;  %v100_v30 = vrot.slane %v84_v22, %v76_v6 }
  0x2f   :  { %v166_v21 = vrot.slane %v144_v15, %v76_v6  ;;  %v173_v25 = vrot.slane %v145_v19, %v76_v6  ;;  %v174_v26 = vcombine.high %v152_v16, %v152_v16  ;;  %v175_v27 = vcombine.high %v159_v20, %v159_v20 }
  0x30   :  { %v107_v31 = vrot.slane %v85_v23, %v76_v6  ;;  %v115_v32 = vcombine.high %v93_v24, %v93_v24  ;;  %v186_v34 = vmul.f32 %v152_v16, %v93_v24  ;;  %v114_v35 = vrot.slane %v86_v29, %v76_v6 }
  0x31   :  { %v176_v28 = vcombine.high %v166_v21, %v166_v21  ;;  %v177_v33 = vcombine.high %v173_v25, %v173_v25  ;;  %v116_v36 = vcombine.high %v100_v30, %v100_v30  ;;  %v190_v40 = vmul.f32 %v159_v20, %v100_v30 }
  0x32   :  { %v117_v37 = vcombine.high %v107_v31, %v107_v31  ;;  %v187_v38 = vmul.f32 %v166_v21, %v107_v31  ;;  %v188_v39 = vmul.f32 %v174_v26, %v115_v32  ;;  %v118_v41 = vcombine.high %v114_v35, %v114_v35 }
  0x33   :  { %v191_v43 = vmul.f32 %v173_v25, %v114_v35  ;;  %v192_v44 = vmul.f32 %v175_v27, %v116_v36 }
  0x34   :  { %v189_v42 = vmul.f32 %v176_v28, %v117_v37  ;;  %v219_v45 = vcombine.low %v186_v34, %v187_v38  ;;  %v193_v46 = vmul.f32 %v177_v33, %v118_v41 }
  0x35   :  { %v221_v48 = vcombine.low %v190_v40, %v191_v43 }
  0x36   :  { %v220_v47 = vcombine.low %v188_v39, %v189_v42  ;;  %v229_v49 = vrot.slane %v219_v45, %v76_v6  ;;  %v222_v50 = vcombine.low %v192_v44, %v193_v46 }
  0x37   :  { %v243_v52 = vrot.slane %v221_v48, %v76_v6 }
  0x38   :  { %v236_v51 = vrot.slane %v220_v47, %v76_v6  ;;  %v250_v53 = vrot.slane %v222_v50, %v76_v6 }
  0x3a   :  { %v251_v54 = vcombine.low %v229_v49, %v236_v51  ;;  %v252_v55 = vcombine.low %v243_v52, %v250_v53 }
  0x3c   :  { %v259_v56 = vrot.slane %v251_v54, %v76_v6  ;;  %v266_v57 = vrot.slane %v252_v55, %v76_v6 }
  0x3e   :  { %v267_v58 = vcombine.low %v259_v56, %v266_v57 }
  0x40   :  { %276 = vadd.xlane.f32.xlu0 %v267_v58 }
  0xc9   :  { %v277_v59 = vpop.xlane.xlu0 %276 }
  0xca   :  { %v278_v60 = vrot.slane %v277_v59, 4 }
  0xcc   :  { %v279_v61 = vadd.f32 %v278_v60, %v277_v59 }
  0xce   :  { %v280_v62 = vrot.slane %v279_v61, 2 }
  0xd0   :  { %v281_v63 = vadd.f32 %v280_v62, %v279_v61 }
  0xd2   :  { %v282_v0 = vrot.slane %v281_v63, 1 }
  0xd4   :  { %v283_v1 = vadd.f32 %v282_v0, %v281_v63 }
  0xd6   :  { %305 = vpush %v283_v1 }
 0x107   :  { %s306_s26 = spop %305 }
 0x108   :  { %v285_v3 = vstv %s306_s26 }
 0x109   :  { %v286_v4 = vadd.f32 %v285_v3, %v274_v2 }
 0x10b   :  { %288 = vst.msk [vmem:[#allocation9] sm:$0x1] %vm63_vm0, %v286_v4 }
 0x10c   :  { %385 = shalt.err (!%p382_p5)
}
 0x10d   :  { %298 = dma.vmem_to_hbm [thread:$0]  %s296_s2, 16, %s443_s3, [#allocation5]  }
 0x10e   :  { %398 = dma.done.wait [#allocation5], 16  }
 0x10f   :  { %399 = vsyncadd [#allocation5], 4294967280 }
 0x110   :  { %302 = vsyncpa [#allocation4], 1 }
 0x111   :  { %303 = vsyncpa [#allocation7], 1 }
 0x112   :  { %304 = vsyncpa [#allocation5], 1 }

</bundles_post_ra>
